<compile_context>
chip_gen: v5e
topology: v5e:2x2
jax: 0.10.0
libtpu: 0.0.40
codegen_flags: <defaults>
</compile_context>

<pallas_src>
import jax
import jax.numpy as jnp
from jax.experimental import pallas as pl
from jax.experimental.pallas import tpu as pltpu

LAMBDA_C = 1.0
LAMBDA_S = 0.1
MAX_SEPARATION_LOSS = 10.0
EPS_NORMALIZE = 1e-12
MIN_TOTAL_LOSS = 1e-8

NUM_CORE_PARTIALS = 2       # leading "parallel" grid axis (v7x megacore split)
_OUT_ROWS_PER_CORE = 8      # keep each per-core output block (8, 128)-aligned


def _round_up(x, m):
    return ((x + m - 1) // m) * m


def _vmem_capacity_bytes():
    try:
        return int(pltpu.get_tpu_info().vmem_capacity_bytes)
    except Exception:
        return 64 * 1024 * 1024   # conservative fallback (v7x-sized)


def _center_loss_kernel(emb_ref, lab_ref, cen_ref, csq_ref, out_ref, acc_ref):
    """Accumulates masked ||e - c||^2 sums into lanes 0 (bona) / 1 (morph) of acc_ref."""
    i = pl.program_id(1)

    @pl.when(i == 0)
    def _init():
        acc_ref[...] = jnp.zeros_like(acc_ref)

    emb = emb_ref[...]                                              # (TB, D), native dtype
    # x . [bc | mc | 0 ...] on the MXU (bf16 fed natively), f32 accumulation.
    xc = jnp.dot(emb, cen_ref[...], preferred_element_type=jnp.float32)   # (TB, 128)

    # ||x||^2 per row (upcast inline — no standalone f32 copy of the tile).
    sumsq = jnp.sum(jnp.square(emb.astype(jnp.float32)), axis=1, keepdims=True)  # (TB, 1)
    # F.normalize: e = x / max(||x||, eps)  =>  inv = rsqrt(max(||x||^2, eps^2)).
    inv = jax.lax.rsqrt(jnp.maximum(sumsq, EPS_NORMALIZE * EPS_NORMALIZE))       # (TB, 1)
    e_sq = sumsq * (inv * inv)                                      # exact ||e||^2

    # ||e - c||^2 = ||e||^2 - 2*(x.c)*inv + ||c||^2  for c in {bona(lane0), morph(lane1)}.
    sq = e_sq - 2.0 * (inv * xc) + csq_ref[...]                     # (TB, 128)

    lab = lab_ref[...]                                              # (TB, 1) int32, -1 = pad
    lane = jax.lax.broadcasted_iota(jnp.int32, (1, 128), 1)
    mask = ((lane == 0) & (lab == 0)) | ((lane == 1) & (lab == 1))  # (TB, 128)
    acc_ref[...] += jnp.where(mask, sq, 0.0)

    @pl.when(i == pl.num_programs(1) - 1)
    def _finalize():
        red = jnp.sum(acc_ref[...], axis=0, keepdims=True)          # (1, 128)
        out_ref[...] = jnp.broadcast_to(red, out_ref.shape).astype(out_ref.dtype)


def center_loss(embeddings, labels, bonafide_center, morph_center, *, tb=8192):
    """embeddings: (B, D) f32/bf16; labels: (B, C) one-hot/logits; centers: (1, D) f32.
    Returns the scalar total loss (f32), matching the PyTorch module forward."""
    B, D = embeddings.shape
    itemsize = jnp.dtype(embeddings.dtype).itemsize

    # Glue: class index per row (torch.argmax(labels, dim=1)) and class counts.
    labels_idx = jnp.argmax(labels, axis=1).astype(jnp.int32)
    cnt_b = jnp.sum((labels_idx == 0).astype(jnp.float32))
    cnt_m = jnp.sum((labels_idx == 1).astype(jnp.float32))
    labels_col = labels_idx.reshape(B, 1)

    # Generation-aware tile: budget the double-buffered embedding stream at ~1/4 of
    # physical VMEM, capped at 32 MiB and 8192 rows.
    cap = _vmem_capacity_bytes()
    stream_budget = max(4 << 20, min(cap // 4, 32 << 20))
    max_rows = max(8, min(8192, (stream_budget // max(1, 2 * D * itemsize)) // 8 * 8))
    per_core = pl.cdiv(B, NUM_CORE_PARTIALS)
    tb_eff = _round_up(max(8, min(tb, _round_up(per_core, 8), max_rows)), 8)

    # Pad the batch; padded rows get label -1 (match neither class, zero contribution).
    Bp = _round_up(B, NUM_CORE_PARTIALS * tb_eff)
    if Bp != B:
        pad = Bp - B
        embeddings = jnp.pad(embeddings, ((0, pad), (0, 0)))
        labels_col = jnp.pad(labels_col, ((0, pad), (0, 0)), constant_values=-1)
    n_inner = Bp // (NUM_CORE_PARTIALS * tb_eff)

    # Centers as a lane-padded (D, 128) MXU operand: lane 0 = bonafide, lane 1 = morph.
    bc32 = bonafide_center.astype(jnp.float32)
    mc32 = morph_center.astype(jnp.float32)
    cen = jnp.zeros((D, 128), jnp.float32)
    cen = cen.at[:, 0].set(bc32[0]).at[:, 1].set(mc32[0]).astype(embeddings.dtype)
    csq = jnp.zeros((1, 128), jnp.float32)
    csq = csq.at[0, 0].set(jnp.sum(bc32 * bc32)).at[0, 1].set(jnp.sum(mc32 * mc32))

    vmem_need = (2 * tb_eff * D * itemsize        # double-buffered embedding stream
                 + 2 * tb_eff * 128 * 4           # label column (lane-padded int32)
                 + 2 * D * 128 * itemsize         # centers MXU operand
                 + tb_eff * 128 * 4               # packed accumulator scratch
                 + (2 << 20))                     # csq / output / headroom
    vmem_limit = int(min(max(vmem_need * 3 // 2, 32 << 20), cap * 3 // 4))

    cost = pl.CostEstimate(
        flops=2 * Bp * 128 * D + 4 * Bp * D,
        transcendentals=Bp,
        bytes_accessed=(Bp * D * itemsize + Bp * 4 + D * 128 * itemsize
                        + 128 * 4 + NUM_CORE_PARTIALS * _OUT_ROWS_PER_CORE * 128 * 4))

    out = pl.pallas_call(
        _center_loss_kernel,
        out_shape=jax.ShapeDtypeStruct(
            (NUM_CORE_PARTIALS * _OUT_ROWS_PER_CORE, 128), jnp.float32),
        grid_spec=pltpu.PrefetchScalarGridSpec(
            num_scalar_prefetch=0,
            grid=(NUM_CORE_PARTIALS, n_inner),
            in_specs=[
                pl.BlockSpec((tb_eff, D), lambda c, i: (c * n_inner + i, 0)),  # embeddings
                pl.BlockSpec((tb_eff, 1), lambda c, i: (c * n_inner + i, 0)),  # label ids
                pl.BlockSpec((D, 128), lambda c, i: (0, 0)),                   # centers
                pl.BlockSpec((1, 128), lambda c, i: (0, 0)),                   # ||c||^2 row
            ],
            out_specs=pl.BlockSpec((_OUT_ROWS_PER_CORE, 128), lambda c, i: (c, 0)),
            scratch_shapes=[pltpu.VMEM((tb_eff, 128), jnp.float32)],
        ),
        compiler_params=pltpu.CompilerParams(
            dimension_semantics=("parallel", "arbitrary"),
            vmem_limit_bytes=vmem_limit),
        cost_estimate=cost,
    )(embeddings, labels_col, cen, csq)

    # Scalar epilogue (glue): combine per-core partials, counts, separation, clamps.
    partials = out.reshape(NUM_CORE_PARTIALS, _OUT_ROWS_PER_CORE, 128)[:, 0, :]
    sums = jnp.sum(partials, axis=0)                                # (128,)
    s_bsq, s_msq = sums[0], sums[1]
    bona_loss = jnp.where(cnt_b > 0.0, s_bsq / (jnp.maximum(cnt_b, 1.0) * D), 0.0)
    morph_loss = jnp.where(cnt_m > 0.0, s_msq / (jnp.maximum(cnt_m, 1.0) * D), 0.0)
    diff = bc32 - mc32
    sep = jnp.minimum(jnp.sqrt(jnp.sum(diff * diff)), MAX_SEPARATION_LOSS)
    total = LAMBDA_C * (bona_loss + morph_loss) - LAMBDA_S * sep
    return jnp.maximum(total, MIN_TOTAL_LOSS)


def center_loss_ref(embeddings, labels, bonafide_center, morph_center):
    """Pure-JAX reference mirroring the PyTorch module forward."""
    e = embeddings / jnp.maximum(
        jnp.linalg.norm(embeddings, axis=1, keepdims=True), EPS_NORMALIZE)
    lab = jnp.argmax(labels, axis=1)
    D = embeddings.shape[1]

    def masked_mse(mask, center):
        cnt = jnp.sum(mask.astype(jnp.float32))
        sq = jnp.sum(jnp.where(mask[:, None], (e - center) ** 2, 0.0))
        return jnp.where(cnt > 0, sq / (jnp.maximum(cnt, 1.0) * D), 0.0)

    bona = masked_mse(lab == 0, bonafide_center)
    morph = masked_mse(lab == 1, morph_center)
    sep = jnp.minimum(
        jnp.sqrt(jnp.sum((bonafide_center - morph_center) ** 2)),
        MAX_SEPARATION_LOSS)
    return jnp.maximum(LAMBDA_C * (bona + morph) - LAMBDA_S * sep, MIN_TOTAL_LOSS)


if __name__ == "__main__":
    B, D, C = 32, 128, 2   # small embedding_dim for the demo (module default 768)
    key = jax.random.PRNGKey(0)
    k_emb, k_lab, k_bc, k_mc = jax.random.split(key, 4)

    embeddings = jax.random.normal(k_emb, (B, D), dtype=jnp.float32)
    labels_int = jax.random.randint(k_lab, (B,), 0, C)
    labels = jax.nn.one_hot(labels_int, C, dtype=jnp.float32)
    bonafide_center = jax.random.normal(k_bc, (1, D), dtype=jnp.float32)
    morph_center = jax.random.normal(k_mc, (1, D), dtype=jnp.float32)

    # MXU f32 matmuls may run at bf16-pass precision -> compare at 1e-3.
    TOL = dict(rtol=1e-3, atol=1e-3)

    ref = jax.block_until_ready(
        center_loss_ref(embeddings, labels, bonafide_center, morph_center))

    # Single inner step per core.
    out = jax.block_until_ready(
        center_loss(embeddings, labels, bonafide_center, morph_center))
    assert jnp.allclose(out, ref, **TOL), (out, ref)

    # Multi-step grid path (exercises cross-step accumulation on each core).
    out2 = jax.block_until_ready(
        center_loss(embeddings, labels, bonafide_center, morph_center, tb=8))
    assert jnp.allclose(out2, ref, **TOL), (out2, ref)

    # Ragged batch (exercises padding with sentinel labels).
    B2 = 13
    ref2 = jax.block_until_ready(
        center_loss_ref(embeddings[:B2], labels[:B2], bonafide_center, morph_center))
    out3 = jax.block_until_ready(
        center_loss(embeddings[:B2], labels[:B2], bonafide_center, morph_center))
    assert jnp.allclose(out3, ref2, **TOL), (out3, ref2)

    # bf16 embeddings fed natively to the MXU.
    emb_bf16 = embeddings.astype(jnp.bfloat16)
    ref_bf = jax.block_until_ready(
        center_loss_ref(emb_bf16.astype(jnp.float32), labels,
                        bonafide_center, morph_center))
    out_bf = jax.block_until_ready(
        center_loss(emb_bf16, labels, bonafide_center, morph_center))
    assert jnp.allclose(out_bf, ref_bf, rtol=2e-2, atol=2e-2), (out_bf, ref_bf)

    print("KERNEL_OK")
</pallas_src>

<mosaic_0001>
module attributes {stable_mosaic.version = 11 : i64} {
  func.func @_center_loss_kernel(%arg0: i32, %arg1: i32, %arg2: memref<16x128xf32, #tpu.memory_space<vmem>>, %arg3: memref<16x1xi32, #tpu.memory_space<vmem>>, %arg4: memref<128x128xf32, #tpu.memory_space<vmem>>, %arg5: memref<1x128xf32, #tpu.memory_space<vmem>>, %arg6: memref<8x128xf32, #tpu.memory_space<vmem>>, %arg7: memref<16x128xf32, #tpu.memory_space<vmem>>) attributes {dimension_semantics = [#tpu.dimension_semantics<parallel>, #tpu.dimension_semantics<arbitrary>], iteration_bounds = array<i64: 2, 1>, scalar_prefetch = 0 : i64, scratch_operands = 1 : i64, tpu.core_type = #tpu.core_type<tc>, window_params = [{transform_indices = @transform_0, window_bounds = array<i64: 16, 128>}, {transform_indices = @transform_1, window_bounds = array<i64: 16, 1>}, {pipeline_mode = #tpu.pipeline_mode<synchronous>, transform_indices = @transform_2, window_bounds = array<i64: 128, 128>}, {pipeline_mode = #tpu.pipeline_mode<synchronous>, transform_indices = @transform_3, window_bounds = array<i64: 1, 128>}, {transform_indices = @transform_4, window_bounds = array<i64: 8, 128>}]} {
    %c0_i32 = arith.constant 0 : i32
    %0 = arith.cmpi eq, %arg1, %c0_i32 : i32
    %1 = arith.extui %0 : i1 to i32
    %c0_i32_0 = arith.constant 0 : i32
    %2 = arith.cmpi ne, %1, %c0_i32_0 : i32
    scf.if %2 {
      %cst_21 = arith.constant 0.000000e+00 : f32
      %48 = vector.broadcast %cst_21 : f32 to vector<16x128xf32>
      %c0_22 = arith.constant 0 : index
      %c0_23 = arith.constant 0 : index
      %49 = vector.load %arg7[%c0_22, %c0_23] : memref<16x128xf32, #tpu.memory_space<vmem>>, vector<16x128xf32>
      tpu.vector_store %arg7[%c0_22, %c0_23], %48 {strides = array<i32>} : memref<16x128xf32, #tpu.memory_space<vmem>>, vector<16x128xf32>,
    } else {
    }
    %c0 = arith.constant 0 : index
    %c0_1 = arith.constant 0 : index
    %3 = vector.load %arg2[%c0, %c0_1] : memref<16x128xf32, #tpu.memory_space<vmem>>, vector<16x128xf32>
    %c0_2 = arith.constant 0 : index
    %c0_3 = arith.constant 0 : index
    %4 = vector.load %arg4[%c0_2, %c0_3] : memref<128x128xf32, #tpu.memory_space<vmem>>, vector<128x128xf32>
    %cst = arith.constant dense<0.000000e+00> : vector<16x128xf32>
    %5 = tpu.matmul %3, %4, %cst {dimension_numbers = #tpu.dot_dimension_numbers<[1], [0], [0], [1], [0, 0, 1, 1], [], []>} : vector<16x128xf32>, vector<128x128xf32>, vector<16x128xf32> -> vector<16x128xf32>
    %6 = arith.mulf %3, %3 : vector<16x128xf32>
    %cst_4 = arith.constant dense<0.000000e+00> : vector<16xf32>
    %7 = vector.multi_reduction <add>, %6, %cst_4 [1] : vector<16x128xf32> to vector<16xf32>
    %8 = vector.shape_cast %7 : vector<16xf32> to vector<16x1xf32>
    %cst_5 = arith.constant 1.000000e-24 : f32
    %9 = vector.broadcast %cst_5 : f32 to vector<16x1xf32>
    %10 = arith.maximumf %8, %9 : vector<16x1xf32>
    %11 = math.rsqrt %10 : vector<16x1xf32>
    %12 = arith.mulf %11, %11 : vector<16x1xf32>
    %13 = arith.mulf %8, %12 : vector<16x1xf32>
    %14 = vector.broadcast %11 : vector<16x1xf32> to vector<16x128xf32>
    %15 = arith.mulf %14, %5 : vector<16x128xf32>
    %cst_6 = arith.constant 2.000000e+00 : f32
    %16 = vector.broadcast %cst_6 : f32 to vector<16x128xf32>
    %17 = arith.mulf %16, %15 : vector<16x128xf32>
    %18 = vector.broadcast %13 : vector<16x1xf32> to vector<16x128xf32>
    %19 = arith.subf %18, %17 : vector<16x128xf32>
    %c0_7 = arith.constant 0 : index
    %c0_8 = arith.constant 0 : index
    %20 = vector.load %arg5[%c0_7, %c0_8] : memref<1x128xf32, #tpu.memory_space<vmem>>, vector<1x128xf32>
    %21 = vector.broadcast %20 : vector<1x128xf32> to vector<16x128xf32>
    %22 = arith.addf %19, %21 : vector<16x128xf32>
    %c0_9 = arith.constant 0 : index
    %c0_10 = arith.constant 0 : index
    %23 = vector.load %arg3[%c0_9, %c0_10] : memref<16x1xi32, #tpu.memory_space<vmem>>, vector<16x1xi32>
    %24 = tpu.iota {dimensions = array<i32: 1>} : vector<1x128xi32>
    %c0_i32_11 = arith.constant 0 : i32
    %25 = vector.broadcast %c0_i32_11 : i32 to vector<1x128xi32>
    %26 = arith.cmpi eq, %24, %25 : vector<1x128xi32>
    %c0_i32_12 = arith.constant 0 : i32
    %27 = vector.broadcast %c0_i32_12 : i32 to vector<16x1xi32>
    %28 = arith.cmpi eq, %23, %27 : vector<16x1xi32>
    %29 = vector.broadcast %26 : vector<1x128xi1> to vector<16x128xi1>
    %30 = vector.broadcast %28 : vector<16x1xi1> to vector<16x128xi1>
    %31 = arith.andi %29, %30 : vector<16x128xi1>
    %c1_i32 = arith.constant 1 : i32
    %32 = vector.broadcast %c1_i32 : i32 to vector<1x128xi32>
    %33 = arith.cmpi eq, %24, %32 : vector<1x128xi32>
    %c1_i32_13 = arith.constant 1 : i32
    %34 = vector.broadcast %c1_i32_13 : i32 to vector<16x1xi32>
    %35 = arith.cmpi eq, %23, %34 : vector<16x1xi32>
    %36 = vector.broadcast %33 : vector<1x128xi1> to vector<16x128xi1>
    %37 = vector.broadcast %35 : vector<16x1xi1> to vector<16x128xi1>
    %38 = arith.andi %36, %37 : vector<16x128xi1>
    %39 = arith.ori %31, %38 : vector<16x128xi1>
    %c0_14 = arith.constant 0 : index
    %c0_15 = arith.constant 0 : index
    %40 = vector.load %arg7[%c0_14, %c0_15] : memref<16x128xf32, #tpu.memory_space<vmem>>, vector<16x128xf32>
    %cst_16 = arith.constant 0.000000e+00 : f32
    %41 = vector.broadcast %cst_16 : f32 to vector<16x128xf32>
    %42 = arith.select %39, %22, %41 : vector<16x128xi1>, vector<16x128xf32>
    %43 = arith.addf %40, %42 : vector<16x128xf32>
    %c0_17 = arith.constant 0 : index
    %c0_18 = arith.constant 0 : index
    %44 = vector.load %arg7[%c0_17, %c0_18] : memref<16x128xf32, #tpu.memory_space<vmem>>, vector<16x128xf32>
    tpu.vector_store %arg7[%c0_17, %c0_18], %43 {strides = array<i32>} : memref<16x128xf32, #tpu.memory_space<vmem>>, vector<16x128xf32>,
    %c0_i32_19 = arith.constant 0 : i32
    %45 = arith.cmpi eq, %arg1, %c0_i32_19 : i32
    %46 = arith.extui %45 : i1 to i32
    %c0_i32_20 = arith.constant 0 : i32
    %47 = arith.cmpi ne, %46, %c0_i32_20 : i32
    scf.if %47 {
      %c0_21 = arith.constant 0 : index
      %c0_22 = arith.constant 0 : index
      %48 = vector.load %arg7[%c0_21, %c0_22] : memref<16x128xf32, #tpu.memory_space<vmem>>, vector<16x128xf32>
      %cst_23 = arith.constant dense<0.000000e+00> : vector<128xf32>
      %49 = vector.multi_reduction <add>, %48, %cst_23 [0] : vector<16x128xf32> to vector<128xf32>
      %50 = vector.shape_cast %49 : vector<128xf32> to vector<1x128xf32>
      %51 = vector.shape_cast %50 : vector<1x128xf32> to vector<1x128xf32>
      %52 = vector.broadcast %51 : vector<1x128xf32> to vector<8x128xf32>
      %c0_24 = arith.constant 0 : index
      %c0_25 = arith.constant 0 : index
      %53 = vector.load %arg6[%c0_24, %c0_25] : memref<8x128xf32, #tpu.memory_space<vmem>>, vector<8x128xf32>
      tpu.vector_store %arg6[%c0_24, %c0_25], %52 {strides = array<i32>} : memref<8x128xf32, #tpu.memory_space<vmem>>, vector<8x128xf32>,
    } else {
    }
    return
  }
  func.func @transform_0(%arg0: i32, %arg1: i32) -> (i32, i32) {
    %c1_i32 = arith.constant 1 : i32
    %0 = arith.muli %arg0, %c1_i32 : i32
    %1 = arith.addi %0, %arg1 : i32
    %c0_i32 = arith.constant 0 : i32
    %c0_i32_0 = arith.constant 0 : i32
    return %1, %c0_i32 : i32, i32
  }
  func.func @transform_1(%arg0: i32, %arg1: i32) -> (i32, i32) {
    %c1_i32 = arith.constant 1 : i32
    %0 = arith.muli %arg0, %c1_i32 : i32
    %1 = arith.addi %0, %arg1 : i32
    %c0_i32 = arith.constant 0 : i32
    %c0_i32_0 = arith.constant 0 : i32
    return %1, %c0_i32 : i32, i32
  }
  func.func @transform_2(%arg0: i32, %arg1: i32) -> (i32, i32) {
    %c0_i32 = arith.constant 0 : i32
    %c0_i32_0 = arith.constant 0 : i32
    %c0_i32_1 = arith.constant 0 : i32
    return %c0_i32, %c0_i32_0 : i32, i32
  }
  func.func @transform_3(%arg0: i32, %arg1: i32) -> (i32, i32) {
    %c0_i32 = arith.constant 0 : i32
    %c0_i32_0 = arith.constant 0 : i32
    %c0_i32_1 = arith.constant 0 : i32
    return %c0_i32, %c0_i32_0 : i32, i32
  }
  func.func @transform_4(%arg0: i32, %arg1: i32) -> (i32, i32) {
    %c0_i32 = arith.constant 0 : i32
    %c0_i32_0 = arith.constant 0 : i32
    return %arg0, %c0_i32 : i32, i32
  }
}

</mosaic_0001>

<bundles_post_ra>
// kernel: tpu_custom_call.1
= control target key start
LH: loop header
LB: loop body
LE: loop exit
PB: predicated region body
PF: predicated region fallthrough
CT: control target
= control target key end

     0   :  { %9 = vsyncpa [#allocation4], 0  ;;  %s890_s0 = inlined_call_operand.vmem [shape: f32[32,128], index: 0, kind: input, shape index: {}]   ;;  %s891_s1 = inlined_call_operand.vmem [shape: s32[32,1], index: 1, kind: input, shape index: {}]   ;;  %s892_s2 = inlined_call_operand.hbm [shape: f32[128,128], index: 2, kind: input, shape index: {}]   ;;  %s893_s3 = inlined_call_operand.vmem [shape: f32[1,128], index: 3, kind: input, shape index: {}]   ;;  %s894_s4 = inlined_call_operand.hbm [shape: f32[16,128], index: 4, kind: output, shape index: {}]  }
   0x1   :  { %10 = vsyncpa [#allocation5], 0 }
   0x2   :  { %12 = vsyncpa [#allocation5 + $0x1], 0  ;;  %s774_s15 = smov 0   ;;  %s776_s16 = smov 0  }
   0x3   :  { %s778_s17 = smov 0   ;;  %s780_s18 = smov 0  }
   0x4   :  { %s782_s19 = smov 0   ;;  %s784_s20 = smov 0  }
   0x5 LB: > { %s522_s21 = sadd.s32 4294967295, %s743_s20   ;;  %s523_s22 = sadd.s32 4294967294, %s743_s20   ;;  %s743_s20 = sphi %s784_s20, %s18_s20   ;;  %s739_s19 = sphi %s782_s19, %s903_s19   ;;  %s735_s18 = sphi %s780_s18, %s902_s18   ;;  %s731_s17 = sphi %s778_s17, %s901_s17   ;;  %s727_s16 = sphi %s776_s16, %s900_s16   ;;  %s723_s15 = sphi %s774_s15, %s899_s15  }
   0x6   : > { %s30_s23 = sadd.s32 1, %s739_s19  ;;  %s135_s24 = sadd.s32 1, %s731_s17 }
   0x7   : > { %p32_p0 = scmp.ge.s32.totalorder %s30_s23, 2  ;;  %p145_p1 = scmp.ne.s32.totalorder %s731_s17, %s727_s16 }
   0x8   : > { %p146_p2 = scmp.eq.s32.totalorder %s522_s21, 1  ;;  %p151_p3 = scmp.ne.s32.totalorder %s727_s16, %s723_s15 }
   0x9   : > { %s905_s23 = smov (%p32_p0, %s30_s23), 0  ;;  %p152_p5 = scmp.eq.s32.totalorder %s523_s22, 1 }
   0xa   : > { %p814_p4 = por %p146_p2, %p145_p1  ;;  %s132_s26 = ssub.s32 %s739_s19, %s905_s23 }
   0xb   : > { %p524_p6 = scmp.ge.s32.totalorder %s743_s20, 1  ;;  %p133_p7 = scmp.eq.s32.totalorder %s132_s26, 0 }
   0xc   : > { %p821_p8 = por %p152_p5, %p151_p3  ;;  %p159_p9 = scmp.lt.s32.totalorder %s743_s20, 3 }
   0xd   : > { %s827_s28 = scalar_select %p133_p7, %s731_s17, %s135_s24  }
   0xe   : > { %p160_p10 = pnand %p524_p6, %p159_p9  ;;  %p568_p11 = scmp.eq.s32.totalorder %s522_s21, 0 }
   0xf   : > { %s170_s5 = sshll.u32 %s892_s2, 4  ;;  %s745_s6 = smov [#allocation3]   ;;  %s171_s5 = int_to_ptr.hbm [resolvable:$true] %s170_s5 }
  0x10   : > { %p560_p12 = pneg %p160_p10  ;;  %s172_s7 = sshll.u32 %s745_s6, 4  ;;  %s173_s7 = int_to_ptr.vmem [resolvable:$true] %s172_s7 }
  0x11   : > { %s746_s8 = smov 128   ;;  %s747_s9 = smov 8  }
  0x12   : > { %p561_p13 = pnand %p568_p11, %p560_p12  ;;  %213 = sbr.rel (%p160_p10) target bundleno = 210 (0xd2), region = 36 }
  0x14   : > { %563 = dma.hbm_to_vmem [thread:$0]  (!%p561_p13), %s171_s5, 2048, %s173_s7, [#allocation4], %s746_s8, %s746_s8, %s747_s9  }
  0x17   : > { %714 = dma.done.wait (%p568_p11), [#allocation4], 2048  }
  0x18   : > { %716 = vsyncadd (%p568_p11), [#allocation4], 4294965248  ;;  %s530_s10 = sshll.u32 %s735_s18, 1  ;;  %v748_v0 = vmov 0   ;;  %v286_v1 = vld [vmem:[#allocation3 + $0x78] sm:$0xff]  ;;  %v285_v2 = vld [vmem:[#allocation3 + $0x70] sm:$0xff]  ;;  %v356_v43 = vlaneseq }
  0x19   : > { %p249_p0 = scmp.lt.s32.totalorder %s530_s10, 3  ;;  %623 = vset.pattern.permute.xlu1 %v748_v0  ;;  %624 = vset.pattern.permute.xlu2 %v748_v0  ;;  %v284_v5 = vld [vmem:[#allocation3 + $0x68] sm:$0xff]  ;;  %v283_v6 = vld [vmem:[#allocation3 + $0x60] sm:$0xff]  ;;  %v282_v8 = vld [vmem:[#allocation3 + $0x58] sm:$0xff]  ;;  %s244_s30 = sand.u32 1, %s727_s16  }
  0x1a   : > { %625 = vset.pattern.permute.xlu0 %v748_v0  ;;  %287 = vmatpush.msra.mxu0 %v286_v1  ;;  %v281_v10 = vld [vmem:[#allocation3 + $0x50] sm:$0xff]  ;;  %v280_v15 = vld [vmem:[#allocation3 + $0x48] sm:$0xff]  ;;  %v279_v16 = vld [vmem:[#allocation3 + $0x40] sm:$0xff]  ;;  %v357_v46 = vand.u32 127, %v356_v43  ;;  %s529_s5 = sshll.u32 %s244_s30, 3  ;;  %s535_s6 = sshll.u32 %s735_s18, 3 }
  0x1b   : > { %s907_s10 = smov (!%p249_p0, %s530_s10), 3  ;;  %538 = vmatpush.msra.mxu1 %v286_v1  ;;  %v278_v17 = vld [vmem:[#allocation3 + $0x38] sm:$0xff]  ;;  %v277_v20 = vld [vmem:[#allocation3 + $0x30] sm:$0xff]  ;;  %v276_v21 = vld [vmem:[#allocation3 + $0x28] sm:$0xff]  ;;  %s426_s9 = scalar_lea.hbm %s894_s4, %s535_s6 }
  0x1c   : > { %s531_s11 = sshll.u32 %s907_s10, 3  ;;  %288 = vmatpush.msra.mxu0 %v285_v2  ;;  %v275_v22 = vld [vmem:[#allocation3 + $0x20] sm:$0xff]  ;;  %v274_v23 = vld [vmem:[#allocation3 + $0x18] sm:$0xff]  ;;  %v273_v24 = vld [vmem:[#allocation3 + $0x10] sm:$0xff]  ;;  %vm375_vm10 = vcmp.eq.s32.totalorder %v357_v46, 1  ;;  %vm358_vm13 = vcmp.eq.s32.totalorder %v357_v46, 0 }
  0x1d   : > { %s252_s14 = scalar_lea.vmem %s890_s0, %s531_s11  ;;  %539 = vmatpush.msra.mxu1 %v285_v2  ;;  %s260_s24 = scalar_lea.vmem %s891_s1, %s531_s11  ;;  %v272_v25 = vld [vmem:[#allocation3 + $0x8] sm:$0xff]  ;;  %v271_v26 = vld [vmem:[#allocation3] sm:$0xff] }
  0x1e   : > { %v836_v3 = vld [vmem:[%s252_s14] sm:$0xff]  ;;  %289 = vmatpush.msra.mxu0 %v284_v5  ;;  %v270_v7 = vld [vmem:[%s252_s14 + $0x8] sm:$0xff]  ;;  %s246_s10 = scalar_lea.vmem [#allocation6], %s529_s5  ;;  %s430_s12 = sshll.u32 %s426_s9, 4  ;;  %s431_s12 = int_to_ptr.hbm [resolvable:$true] %s430_s12 }
  0x1f   : > { %v310_v4 = vmul.f32 %v836_v3, %v836_v3  ;;  %540 = vmatpush.msra.mxu1 %v284_v5  ;;  %v354_v9 = vld [vmem:[%s260_s24] sm:$0xff]  ;;  %v311_v11 = vmul.f32 %v270_v7, %v270_v7  ;;  %v355_v14 = vld [vmem:[%s260_s24 + $0x8] sm:$0xff]  ;;  %s428_s11 = sshll.u32 %s246_s10, 4  ;;  %s416_s13 = scalar_lea.sflag [#allocation5], %s244_s30  ;;  %s429_s11 = int_to_ptr.vmem [resolvable:$true] %s428_s11 }
  0x20   : > { %290 = vmatpush.msra.mxu0 %v283_v6  ;;  %vm359_vm0 = vcmp.eq.s32.totalorder %v354_v9, 0  ;;  %vm376_vm1 = vcmp.eq.s32.totalorder %v354_v9, 1  ;;  %vm360_vm2 = vcmp.eq.s32.totalorder %v355_v14, 0  ;;  %vm377_vm3 = vcmp.eq.s32.totalorder %v355_v14, 1  ;;  %v626_v61 = vld [vmem:[%s893_s3] ss:$0 sm:$0xff] }
  0x21   : > { %312 = vadd.xlane.f32.xlu0 %v310_v4  ;;  %541 = vmatpush.msra.mxu1 %v283_v6  ;;  %v363_v12 = vsel %vm359_vm0, 1, %v748_v0  ;;  %v380_v13 = vsel %vm376_vm1, 1, %v748_v0  ;;  %v364_v18 = vsel %vm360_vm2, 1, %v748_v0  ;;  %v381_v19 = vsel %vm377_vm3, 1, %v748_v0  ;;  %s675_s14 = sshra.s32 %s431_s12, 4  ;;  %s681_s24 = scalar_lea.hbm %s894_s4, 16  ;;  %s676_s14 = int_to_ptr.hbm [resolvable:$true] %s675_s14 }
  0x22   : > { %291 = vmatpush.msra.mxu0 %v282_v8  ;;  %366 = vperm.xlu1 %623, %v363_v12   ;;  %s677_s18 = scalar_lea.hbm %s676_s14, 8  ;;  %p682_p5 = scmp.lt.s32.totalorder %s676_s14, %s894_s4 }
  0x23   : > { %542 = vmatpush.msra.mxu1 %v282_v8  ;;  %383 = vperm.xlu2 %624, %v380_v13   ;;  %p678_p1 = scmp.ne.s32.totalorder %s676_s14, %s677_s18  ;;  %p683_p6 = scmp.lt.s32.totalorder %s681_s24, %s677_s18 }
  0x24   : > { %292 = vmatpush.msra.mxu0 %v281_v10 }
  0x25   : > { %543 = vmatpush.msra.mxu1 %v281_v10  ;;  %p679_p2 = pnand %p678_p1, %p814_p4  ;;  %p684_p7 = por %p683_p6, %p682_p5 }
  0x26   : > { %293 = vmatpush.msra.mxu0 %v280_v15 }
  0x27   : > { %544 = vmatpush.msra.mxu1 %v280_v15  ;;  %p680_p3 = pneg %p679_p2 }
  0x28   : > { %294 = vmatpush.msra.mxu0 %v279_v16 }
  0x29   : > { %314 = vadd.xlane.f32.xlu0 %v311_v11  ;;  %545 = vmatpush.msra.mxu1 %v279_v16  ;;  %p685_p9 = pnand %p684_p7, %p680_p3 }
  0x2a   : > { %295 = vmatpush.msra.mxu0 %v278_v17  ;;  %369 = vperm.xlu1 %623, %v364_v18  }
  0x2b   : > { %546 = vmatpush.msra.mxu1 %v278_v17  ;;  %386 = vperm.xlu2 %624, %v381_v19  }
  0x2c   : > { %296 = vmatpush.msra.mxu0 %v277_v20 }
  0x2d   : > { %547 = vmatpush.msra.mxu1 %v277_v20 }
  0x2e   : > { %297 = vmatpush.msra.mxu0 %v276_v21 }
  0x2f   : > { %548 = vmatpush.msra.mxu1 %v276_v21 }
  0x30   : > { %298 = vmatpush.msra.mxu0 %v275_v22 }
  0x31   : > { %549 = vmatpush.msra.mxu1 %v275_v22 }
  0x32   : > { %299 = vmatpush.msra.mxu0 %v274_v23 }
  0x33   : > { %550 = vmatpush.msra.mxu1 %v274_v23 }
  0x34   : > { %300 = vmatpush.msra.mxu0 %v273_v24 }
  0x35   : > { %551 = vmatpush.msra.mxu1 %v273_v24 }
  0x36   : > { %301 = vmatpush.msra.mxu0 %v272_v25 }
  0x37   : > { %552 = vmatpush.msra.mxu1 %v272_v25 }
  0x38   : > { %302 = vmatpush.msra.mxu0 %v271_v26 }
  0x39   : > { %553 = vmatpush.msra.mxu1 %v271_v26  ;;  %303 = vmatmul.f32.vlgmr.msra.gmra.mxu0 %v836_v3 }
  0x3a   : > { %306 = vmatmul.f32.vlgmr.msra.gmra.mxu1 %v270_v7 }
  0x7d   : > { %v384_v39 = vpop.permute.xlu2 %383 }
  0x7e   : > { %vm388_vm11 = vcmp.eq.s32.totalorder %v384_v39, 1 }
  0x7f   : > { %vm844_vm15 = vmand %vm375_vm10, %vm388_vm11 }
  0x85   : > { %v387_v49 = vpop.permute.xlu2 %386 }
  0x86   : > { %vm389_vm12 = vcmp.eq.s32.totalorder %v387_v49, 1 }
  0x87   : > { %vm391_vm1 = vmand %vm375_vm10, %vm389_vm12 }
  0x94   : > { %v313_v27 = vpop.xlane.xlu0 %312  ;;  %v367_v42 = vpop.permute.xlu1 %366 }
  0x95   : > { %v316_v28 = vmax.f32 %v313_v27, 1e-24  ;;  %vm371_vm14 = vcmp.eq.s32.totalorder %v367_v42, 1 }
  0x96   : > { %vm373_vm2 = vmand %vm358_vm13, %vm371_vm14 }
  0x97   : > { %627 = vrsqrt.f32 %v316_v28  ;;  %vm324_vm4 = vweird.f32 %v316_v28 }
  0x9c   : > { %v315_v29 = vpop.xlane.xlu0 %314  ;;  %v370_v51 = vpop.permute.xlu1 %369 }
  0x9d   : > { %v317_v30 = vmax.f32 %v315_v29, 1e-24  ;;  %v628_v31 = vpop.eup %627  ;;  %vm372_vm0 = vcmp.eq.s32.totalorder %v370_v51, 1 }
  0x9e   : > { %v319_v32 = vmul.f32 %v628_v31, %v316_v28  ;;  %vm325_vm5 = vweird.f32 %v628_v31  ;;  %vm374_vm3 = vmand %vm358_vm13, %vm372_vm0 }
  0x9f   : > { %629 = vrsqrt.f32 %v317_v30  ;;  %vm334_vm6 = vweird.f32 %v317_v30  ;;  %vm326_vm8 = vmor %vm324_vm4, %vm325_vm5 }
  0xa0   : > { %v320_v34 = vmul.f32 %v628_v31, %v319_v32  ;;  %vm392_vm4 = vmor %vm373_vm2, %vm844_vm15 }
  0xa1   : > { %vm393_vm5 = vmor %vm374_vm3, %vm391_vm1 }
  0xa2   : > { %v321_v38 = vmul.f32 0.5, %v320_v34 }
  0xa4   : > { %v322_v41 = vsub.f32 1.5, %v321_v38 }
  0xa5   : > { %v630_v33 = vpop.eup %629 }
  0xa6   : > { %v329_v35 = vmul.f32 %v630_v33, %v317_v30  ;;  %vm335_vm7 = vweird.f32 %v630_v33  ;;  %v323_v45 = vmul.f32 %v628_v31, %v322_v41 }
  0xa7   : > { %vm336_vm9 = vmor %vm334_vm6, %vm335_vm7 }
  0xa8   : > { %v330_v36 = vmul.f32 %v630_v33, %v329_v35  ;;  %v327_v48 = vsel %vm326_vm8, %v628_v31, %v323_v45 }
  0xa9   : > { %v338_v52 = vmul.f32 %v327_v48, %v327_v48 }
  0xaa   : > { %v331_v37 = vmul.f32 0.5, %v330_v36 }
  0xab   : > { %v340_v59 = vmul.f32 %v338_v52, %v313_v27 }
  0xac   : > { %v332_v40 = vsub.f32 1.5, %v331_v37 }
  0xae   : > { %v333_v44 = vmul.f32 %v630_v33, %v332_v40 }
  0xb0   : > { %v337_v47 = vsel %vm336_vm9, %v630_v33, %v333_v44 }
  0xb1   : > { %v339_v50 = vmul.f32 %v337_v47, %v337_v47 }
  0xb3   : > { %v341_v58 = vmul.f32 %v339_v50, %v315_v29 }
  0xb6   : > { %v304_v53 = vpop.f32.mrf.mxu0 }
  0xb7   : > { %v307_v54 = vpop.f32.mrf.mxu1  ;;  %v342_v55 = vmul.f32 %v327_v48, %v304_v53 }
  0xb8   : > { %v343_v56 = vmul.f32 %v337_v47, %v307_v54 }
  0xb9   : > { %v344_v60 = vmul.f32 2.0, %v342_v55 }
  0xba   : > { %v345_v62 = vmul.f32 2.0, %v343_v56 }
  0xbb   : > { %v346_v63 = vsub.f32 %v340_v59, %v344_v60 }
  0xbc   : > { %v347_v0 = vsub.f32 %v341_v58, %v345_v62 }
  0xbd   : > { %v352_v1 = vadd.f32 %v626_v61, %v346_v63 }
  0xbe   : > { %v353_v2 = vadd.f32 %v626_v61, %v347_v0 }
  0xbf   : > { %v396_v3 = vsel %vm392_vm4, %v352_v1, 0.0 }
  0xc0   : > { %v397_v4 = vsel %vm393_vm5, %v353_v2, 0.0 }
  0xc1   : > { %v407_v5 = vadd.f32 %v397_v4, %v396_v3 }
  0xc3   : > { %v408_v6 = vrot.slane %v407_v5, 4 }
  0xc5   : > { %v409_v7 = vadd.f32 %v408_v6, %v407_v5 }
  0xc7   : > { %v410_v8 = vrot.slane %v409_v7, 2 }
  0xc9   : > { %v411_v9 = vadd.f32 %v410_v8, %v409_v7 }
  0xcb   : > { %v412_v10 = vrot.slane %v411_v9, 1 }
  0xcd   : > { %v413_v11 = vadd.f32 %v412_v10, %v411_v9 }
  0xcf   : > { %414 = vst [vmem:[%s246_s10] sm:$0xff] %v413_v11 }
  0xd0   : > { %688 = shalt.err (!%p685_p9)
}
  0xd1   : > { %558 = dma.vmem_to_hbm [thread:$0]  (%p814_p4), %s429_s11, 128, %s431_s12, %s416_s13  }
  0xd2 PF: > { %p570_p10 = scmp.ge.s32.totalorder %s743_s20, 2  ;;  %s442_s30 = sand.u32 1, %s723_s15  }
  0xd3   : > { %s443_s5 = scalar_lea.sflag [#allocation5], %s442_s30 }
  0xd4   : > { %p565_p11 = pnand %p570_p10, %p821_p8 }
  0xd6   : > { %p566_p12 = pneg %p565_p11 }
  0xd8   : > { %718 = dma.done.wait (%p566_p12), %s443_s5, 128  }
  0xd9   : > { %720 = vsyncadd (%p566_p12), %s443_s5, 4294967168  ;;  %s18_s20 = sadd.s32 1, %s743_s20   ;;  %s899_s15 = smov %s727_s16 }
  0xda   : > { %p15_p13 = scmp.ge.s32.totalorder %s18_s20, 4   ;;  %s900_s16 = smov %s731_s17 }
  0xdb   : > { %s901_s17 = smov %s827_s28  ;;  %s902_s18 = smov %s739_s19 }
  0xdc   : > { %s903_s19 = smov %s905_s23  ;;  %17 = sbr.rel (!%p15_p13) target bundleno = 5 (0x5), region = 87 }
  0xe1   :  { %449 = vsyncpa [#allocation4], 1 }
  0xe2   :  { %451 = vsyncpa [#allocation4 + $0x1], 1 }
  0xe3   :  { %452 = vsyncpa [#allocation5], 1 }
  0xe4   :  { %454 = vsyncpa [#allocation5 + $0x1], 1 }

</bundles_post_ra>
